<compile_context>
chip_gen: v7x
topology: tpu7x:2x2x1
jax: 0.10.0
libtpu: 0.0.40
codegen_flags: <defaults>
</compile_context>

<pallas_src>
import functools

import jax
import jax.numpy as jnp
from jax.experimental import pallas as pl
from jax.experimental.pallas import tpu as pltpu


def _round_up(n, m):
    return ((n + m - 1) // m) * m


def _cdiv(a, b):
    return (a + b - 1) // b


# ----------------------------- Pallas kernel --------------------------------
def _mlp_kernel(x_ref, w0_ref, b0_ref, w1_ref, b1_ref, w2_ref, b2_ref, o_ref):
    # Features-first layout: x_ref is (F, tile_B) bf16; batch sits on the 128-lane
    # axis, so all intermediates and the output store are lane-dense.
    x = x_ref[...]                                                   # (F, tB) bf16
    # Layer 0: Linear + ReLU          (H0, F) @ (F, tB) -> (H0, tB), f32 accumulate
    h = jnp.dot(w0_ref[...], x, preferred_element_type=jnp.float32) + b0_ref[...]
    h = jnp.maximum(h, 0.0).astype(jnp.bfloat16)
    # Layer 1: Linear + ReLU          (nn.Dropout(p=0.3) is identity at inference)
    h = jnp.dot(w1_ref[...], h, preferred_element_type=jnp.float32) + b1_ref[...]
    h = jnp.maximum(h, 0.0).astype(jnp.bfloat16)
    # Output layer: Linear (no activation), f32 output
    o = jnp.dot(w2_ref[...], h, preferred_element_type=jnp.float32) + b2_ref[...]
    o_ref[...] = o.astype(o_ref.dtype)


def nngrow_mlp_pallas(xa_t, params_bf16, *, batch_tile):
    """MLP on augmented, features-first input xa_t: (F, B_pad) bf16.

    B_pad % batch_tile == 0.  Weights W_i are bf16 (fan_out, fan_in); biases b_i
    are f32 (fan_out, 1).  Returns f32 (out_dim, B_pad).
    """
    w0, b0, w1, b1, w2, b2 = params_bf16
    F, B_pad = xa_t.shape
    H0, H1, O = w0.shape[0], w1.shape[0], w2.shape[0]
    assert B_pad % batch_tile == 0 and batch_tile % 128 == 0

    grid = (B_pad // batch_tile,)

    # Weights / biases: same full block for every grid step (constant index 0) ->
    # DMA'd once, reused across the whole grid.
    def _const(shape):
        return pl.BlockSpec(shape, lambda i: tuple(0 for _ in shape))

    return pl.pallas_call(
        _mlp_kernel,
        out_shape=jax.ShapeDtypeStruct((O, B_pad), jnp.float32),
        grid_spec=pltpu.PrefetchScalarGridSpec(
            num_scalar_prefetch=0,
            grid=grid,
            in_specs=[
                pl.BlockSpec((F, batch_tile), lambda i: (0, i)),  # x tile (lane-dense)
                _const((H0, F)),   # w0 (bf16)
                _const((H0, 1)),   # b0 (f32)
                _const((H1, H0)),  # w1 (bf16)
                _const((H1, 1)),   # b1 (f32)
                _const((O, H1)),   # w2 (bf16)
                _const((O, 1)),    # b2 (f32)
            ],
            out_specs=pl.BlockSpec((O, batch_tile), lambda i: (0, i)),  # lane-dense
        ),
        compiler_params=pltpu.CompilerParams(
            dimension_semantics=("parallel",),
            # Large tiles need >16 MiB scoped VMEM on v5e; 32 MiB matches the
            # v6e/v7x defaults and keeps the kernel well inside v7x's 64 MiB VMEM.
            vmem_limit_bytes=32 * 1024 * 1024,
        ),
    )(xa_t, w0, b0, w1, b1, w2, b2)


# --------------------------- JAX-side glue -----------------------------------
def _augment_transpose_pad(x, B_pad):
    """BaseNN._augment_input (inp_mode='append', 'r', 'a'), emitted features-first.

    x: (B, 7) with cols [0:3]=position, [3:7]=quaternion (w, x, y, z).
    Returns bf16 (9, B_pad): rows = [x.T ; ||pos|| ; 2*arccos(q_w/||q||)],
    zero-padded on the batch axis.  XLA fuses the norm / arccos / transpose / cast /
    pad into one small pass whose bf16 output is streamed directly by the kernel.
    """
    B = x.shape[0]
    xf = x.astype(jnp.float32)
    pos_norm = jnp.sqrt(jnp.sum(xf[:, :3] ** 2, axis=1))
    # rowan.to_axis_angle normalizes the quaternion; angle = 2*arccos(q_w / ||q||).
    qnorm = jnp.sqrt(jnp.sum(xf[:, 3:7] ** 2, axis=1))
    qw = jnp.clip(xf[:, 3] / jnp.maximum(qnorm, 1e-12), -1.0, 1.0)
    angle = 2.0 * jnp.arccos(qw)
    xa_t = jnp.concatenate([xf.T, pos_norm[None, :], angle[None, :]], axis=0)
    xa_t = xa_t.astype(jnp.bfloat16)
    if B_pad > B:
        xa_t = jnp.pad(xa_t, ((0, 0), (0, B_pad - B)))
    return xa_t


def _choose_tiling(B, batch_tile):
    """Pick (tile, B_pad, n_steps): tile % 128 == 0, tile <= batch_tile,
    B_pad = n_steps * tile >= B, and n_steps is EVEN (>=2) whenever B > 128
    so the grid splits evenly across v7x's two TensorCores."""
    b128 = _round_up(max(B, 1), 128)
    n = _cdiv(b128, batch_tile)          # minimum steps at the tile cap
    if b128 > 128:
        n = max(n, 2)                    # >=2 steps (megacore)
        if n % 2:
            n += 1                       # even step count (v7x balance)
    tile = _round_up(_cdiv(b128, n), 128)
    return tile, n * tile, n


def init_nngrow_params(key, in_dim, hidden_dim, out_dim):
    """PyTorch nn.Linear-style init, stored as (fan_out, fan_in) / (fan_out, 1), f32."""
    dims = [in_dim + 2] + list(hidden_dim) + [out_dim]  # +2 from augmentation
    params = []
    for i in range(len(dims) - 1):
        fan_in, fan_out = dims[i], dims[i + 1]
        key, kw, kb = jax.random.split(key, 3)
        bound = 1.0 / jnp.sqrt(fan_in)
        w = jax.random.uniform(kw, (fan_out, fan_in), jnp.float32, -bound, bound)
        b = jax.random.uniform(kb, (fan_out, 1), jnp.float32, -bound, bound)
        params += [w, b]
    return tuple(params)


@functools.partial(jax.jit, static_argnames=("batch_tile",))
def nngrow_forward(x, params, batch_tile=32768):
    B = x.shape[0]
    tile, B_pad, _ = _choose_tiling(B, batch_tile)
    xa_t = _augment_transpose_pad(x, B_pad)                    # (9, B_pad) bf16
    w0, b0, w1, b1, w2, b2 = params
    params_bf16 = (w0.astype(jnp.bfloat16), b0,
                   w1.astype(jnp.bfloat16), b1,
                   w2.astype(jnp.bfloat16), b2)
    out_t = nngrow_mlp_pallas(xa_t, params_bf16, batch_tile=tile)  # (O, B_pad) f32
    return out_t[:, :B].T                                          # (B, O)


# Pure-JAX reference.  compute_dtype=jnp.bfloat16 mirrors the kernel's precision;
# compute_dtype=jnp.float32 is the original module's full-precision semantics.
def nngrow_forward_ref(x, params, compute_dtype=jnp.float32):
    w0, b0, w1, b1, w2, b2 = params
    xf = x.astype(jnp.float32)
    pos_norm = jnp.sqrt(jnp.sum(xf[:, :3] ** 2, axis=1, keepdims=True))
    qnorm = jnp.sqrt(jnp.sum(xf[:, 3:7] ** 2, axis=1))
    qw = jnp.clip(xf[:, 3] / jnp.maximum(qnorm, 1e-12), -1.0, 1.0)
    angle = (2.0 * jnp.arccos(qw))[:, None]
    h = jnp.concatenate([xf, pos_norm, angle], axis=1).astype(compute_dtype)
    w0c, w1c, w2c = (w.astype(compute_dtype) for w in (w0, w1, w2))
    h = jnp.maximum(jnp.dot(h, w0c.T, preferred_element_type=jnp.float32) + b0.T, 0.0)
    h = jnp.maximum(jnp.dot(h.astype(compute_dtype), w1c.T,
                            preferred_element_type=jnp.float32) + b1.T, 0.0)
    return jnp.dot(h.astype(compute_dtype), w2c.T,
                   preferred_element_type=jnp.float32) + b2.T


# ------------------------------- main ----------------------------------------
if __name__ == "__main__":
    # Small shapes consistent with the module: in_dim=7 (pos[3] + quaternion[4]),
    # hidden_dim=[32, 32], out_dim=8, batch=16.  (The wrapper pads the batch up to
    # a 128-lane tile internally; large workloads use up to 32K-row tiles.)
    in_dim, hidden_dim, out_dim = 7, [32, 32], 8
    batch = 16

    key = jax.random.PRNGKey(0)
    k_params, k_pos, k_quat = jax.random.split(key, 3)

    params = init_nngrow_params(k_params, in_dim, hidden_dim, out_dim)

    def make_input(kp, kq, b):
        pos = jax.random.normal(kp, (b, 3), jnp.float32)
        quat = jax.random.normal(kq, (b, 4), jnp.float32)
        quat = quat / jnp.linalg.norm(quat, axis=1, keepdims=True)  # valid unit quats
        return jnp.concatenate([pos, quat], axis=1)                 # (b, 7)

    x = make_input(k_pos, k_quat, batch)

    out = nngrow_forward(x, params)
    out = jax.block_until_ready(out)
    assert out.shape == (batch, out_dim)

    ref_bf16 = nngrow_forward_ref(x, params, compute_dtype=jnp.bfloat16)
    ref_f32 = nngrow_forward_ref(x, params, compute_dtype=jnp.float32)
    assert jnp.allclose(out, ref_bf16, atol=1e-2, rtol=1e-2), "mismatch vs bf16 reference"
    assert jnp.allclose(out, ref_f32, atol=1e-1, rtol=1e-1), "mismatch vs f32 reference"

    # Exercise a non-divisible batch (multi-step, even grid, padded columns sliced off).
    k2p, k2q = jax.random.split(jax.random.PRNGKey(1))
    x2 = make_input(k2p, k2q, 300)
    out2 = jax.block_until_ready(nngrow_forward(x2, params))
    ref2 = nngrow_forward_ref(x2, params, compute_dtype=jnp.bfloat16)
    assert out2.shape == (300, out_dim)
    assert jnp.allclose(out2, ref2, atol=1e-2, rtol=1e-2), "mismatch vs reference (B=300)"

    print("KERNEL_OK")
</pallas_src>

<mosaic_0001>
module attributes {stable_mosaic.version = 11 : i64} {
  func.func @_mlp_kernel(%arg0: i32, %arg1: memref<9x128xbf16, #tpu.memory_space<vmem>>, %arg2: memref<32x9xbf16, #tpu.memory_space<vmem>>, %arg3: memref<32x1xf32, #tpu.memory_space<vmem>>, %arg4: memref<32x32xbf16, #tpu.memory_space<vmem>>, %arg5: memref<32x1xf32, #tpu.memory_space<vmem>>, %arg6: memref<8x32xbf16, #tpu.memory_space<vmem>>, %arg7: memref<8x1xf32, #tpu.memory_space<vmem>>, %arg8: memref<8x128xf32, #tpu.memory_space<vmem>>) attributes {dimension_semantics = [#tpu.dimension_semantics<parallel>], iteration_bounds = array<i64: 1>, scalar_prefetch = 0 : i64, scratch_operands = 0 : i64, tpu.core_type = #tpu.core_type<tc>, window_params = [{transform_indices = @transform_0, window_bounds = array<i64: 9, 128>}, {pipeline_mode = #tpu.pipeline_mode<synchronous>, transform_indices = @transform_1, window_bounds = array<i64: 32, 9>}, {pipeline_mode = #tpu.pipeline_mode<synchronous>, transform_indices = @transform_2, window_bounds = array<i64: 32, 1>}, {pipeline_mode = #tpu.pipeline_mode<synchronous>, transform_indices = @transform_3, window_bounds = array<i64: 32, 32>}, {pipeline_mode = #tpu.pipeline_mode<synchronous>, transform_indices = @transform_4, window_bounds = array<i64: 32, 1>}, {pipeline_mode = #tpu.pipeline_mode<synchronous>, transform_indices = @transform_5, window_bounds = array<i64: 8, 32>}, {pipeline_mode = #tpu.pipeline_mode<synchronous>, transform_indices = @transform_6, window_bounds = array<i64: 8, 1>}, {transform_indices = @transform_7, window_bounds = array<i64: 8, 128>}]} {
    %c0 = arith.constant 0 : index
    %c0_0 = arith.constant 0 : index
    %0 = vector.load %arg1[%c0, %c0_0] : memref<9x128xbf16, #tpu.memory_space<vmem>>, vector<9x128xbf16>
    %c0_1 = arith.constant 0 : index
    %c0_2 = arith.constant 0 : index
    %1 = vector.load %arg2[%c0_1, %c0_2] : memref<32x9xbf16, #tpu.memory_space<vmem>>, vector<32x9xbf16>
    %cst = arith.constant dense<0.000000e+00> : vector<32x128xf32>
    %2 = tpu.matmul %1, %0, %cst {dimension_numbers = #tpu.dot_dimension_numbers<[1], [0], [0], [1], [0, 0, 1, 1], [], []>} : vector<32x9xbf16>, vector<9x128xbf16>, vector<32x128xf32> -> vector<32x128xf32>
    %c0_3 = arith.constant 0 : index
    %c0_4 = arith.constant 0 : index
    %3 = vector.load %arg3[%c0_3, %c0_4] : memref<32x1xf32, #tpu.memory_space<vmem>>, vector<32x1xf32>
    %4 = vector.broadcast %3 : vector<32x1xf32> to vector<32x128xf32>
    %5 = arith.addf %2, %4 : vector<32x128xf32>
    %cst_5 = arith.constant 0.000000e+00 : f32
    %6 = vector.broadcast %cst_5 : f32 to vector<32x128xf32>
    %7 = arith.maximumf %5, %6 : vector<32x128xf32>
    %8 = arith.truncf %7 : vector<32x128xf32> to vector<32x128xbf16>
    %c0_6 = arith.constant 0 : index
    %c0_7 = arith.constant 0 : index
    %9 = vector.load %arg4[%c0_6, %c0_7] : memref<32x32xbf16, #tpu.memory_space<vmem>>, vector<32x32xbf16>
    %cst_8 = arith.constant dense<0.000000e+00> : vector<32x128xf32>
    %10 = tpu.matmul %9, %8, %cst_8 {dimension_numbers = #tpu.dot_dimension_numbers<[1], [0], [0], [1], [0, 0, 1, 1], [], []>} : vector<32x32xbf16>, vector<32x128xbf16>, vector<32x128xf32> -> vector<32x128xf32>
    %c0_9 = arith.constant 0 : index
    %c0_10 = arith.constant 0 : index
    %11 = vector.load %arg5[%c0_9, %c0_10] : memref<32x1xf32, #tpu.memory_space<vmem>>, vector<32x1xf32>
    %12 = vector.broadcast %11 : vector<32x1xf32> to vector<32x128xf32>
    %13 = arith.addf %10, %12 : vector<32x128xf32>
    %cst_11 = arith.constant 0.000000e+00 : f32
    %14 = vector.broadcast %cst_11 : f32 to vector<32x128xf32>
    %15 = arith.maximumf %13, %14 : vector<32x128xf32>
    %16 = arith.truncf %15 : vector<32x128xf32> to vector<32x128xbf16>
    %c0_12 = arith.constant 0 : index
    %c0_13 = arith.constant 0 : index
    %17 = vector.load %arg6[%c0_12, %c0_13] : memref<8x32xbf16, #tpu.memory_space<vmem>>, vector<8x32xbf16>
    %cst_14 = arith.constant dense<0.000000e+00> : vector<8x128xf32>
    %18 = tpu.matmul %17, %16, %cst_14 {dimension_numbers = #tpu.dot_dimension_numbers<[1], [0], [0], [1], [0, 0, 1, 1], [], []>} : vector<8x32xbf16>, vector<32x128xbf16>, vector<8x128xf32> -> vector<8x128xf32>
    %c0_15 = arith.constant 0 : index
    %c0_16 = arith.constant 0 : index
    %19 = vector.load %arg7[%c0_15, %c0_16] : memref<8x1xf32, #tpu.memory_space<vmem>>, vector<8x1xf32>
    %20 = vector.broadcast %19 : vector<8x1xf32> to vector<8x128xf32>
    %21 = arith.addf %18, %20 : vector<8x128xf32>
    %c0_17 = arith.constant 0 : index
    %c0_18 = arith.constant 0 : index
    %22 = vector.load %arg8[%c0_17, %c0_18] : memref<8x128xf32, #tpu.memory_space<vmem>>, vector<8x128xf32>
    tpu.vector_store %arg8[%c0_17, %c0_18], %21 {strides = array<i32>} : memref<8x128xf32, #tpu.memory_space<vmem>>, vector<8x128xf32>,
    return
  }
  func.func @transform_0(%arg0: i32) -> (i32, i32) {
    %c0_i32 = arith.constant 0 : i32
    %c0_i32_0 = arith.constant 0 : i32
    return %c0_i32, %arg0 : i32, i32
  }
  func.func @transform_1(%arg0: i32) -> (i32, i32) {
    %c0_i32 = arith.constant 0 : i32
    %c0_i32_0 = arith.constant 0 : i32
    %c0_i32_1 = arith.constant 0 : i32
    return %c0_i32, %c0_i32_0 : i32, i32
  }
  func.func @transform_2(%arg0: i32) -> (i32, i32) {
    %c0_i32 = arith.constant 0 : i32
    %c0_i32_0 = arith.constant 0 : i32
    %c0_i32_1 = arith.constant 0 : i32
    return %c0_i32, %c0_i32_0 : i32, i32
  }
  func.func @transform_3(%arg0: i32) -> (i32, i32) {
    %c0_i32 = arith.constant 0 : i32
    %c0_i32_0 = arith.constant 0 : i32
    %c0_i32_1 = arith.constant 0 : i32
    return %c0_i32, %c0_i32_0 : i32, i32
  }
  func.func @transform_4(%arg0: i32) -> (i32, i32) {
    %c0_i32 = arith.constant 0 : i32
    %c0_i32_0 = arith.constant 0 : i32
    %c0_i32_1 = arith.constant 0 : i32
    return %c0_i32, %c0_i32_0 : i32, i32
  }
  func.func @transform_5(%arg0: i32) -> (i32, i32) {
    %c0_i32 = arith.constant 0 : i32
    %c0_i32_0 = arith.constant 0 : i32
    %c0_i32_1 = arith.constant 0 : i32
    return %c0_i32, %c0_i32_0 : i32, i32
  }
  func.func @transform_6(%arg0: i32) -> (i32, i32) {
    %c0_i32 = arith.constant 0 : i32
    %c0_i32_0 = arith.constant 0 : i32
    %c0_i32_1 = arith.constant 0 : i32
    return %c0_i32, %c0_i32_0 : i32, i32
  }
  func.func @transform_7(%arg0: i32) -> (i32, i32) {
    %c0_i32 = arith.constant 0 : i32
    %c0_i32_0 = arith.constant 0 : i32
    return %c0_i32, %arg0 : i32, i32
  }
}

</mosaic_0001>

<bundles_post_ra>
// kernel: nngrow_forward.1
= control target key start
LH: loop header
LB: loop body
LE: loop exit
PB: predicated region body
PF: predicated region fallthrough
CT: control target
= control target key end

     0   :  { %vm79_vm0 = vcmask 1043456   ;;  %vm80_vm1 = vcmask 1044480   ;;  %vm72_vm2 = vcmask 72704   ;;  %v349_v1 = vmov 65535   ;;  %s446_s0 = inlined_call_operand.vmem [shape: bf16[9,128], index: 0, kind: input, shape index: {}]   ;;  %s447_s1 = inlined_call_operand.vmem [shape: bf16[32,9], index: 1, kind: input, shape index: {}]   ;;  %s448_s2 = inlined_call_operand.vmem [shape: f32[32,1], index: 2, kind: input, shape index: {}]   ;;  %s449_s4 = inlined_call_operand.vmem [shape: f32[32,1], index: 4, kind: input, shape index: {}]   ;;  %s450_s6 = inlined_call_operand.vmem [shape: f32[8,1], index: 6, kind: input, shape index: {}]   ;;  %s451_s3 = inlined_call_operand.vmem [shape: bf16[32,32], index: 3, kind: input, shape index: {}]   ;;  %s452_s5 = inlined_call_operand.vmem [shape: bf16[8,32], index: 5, kind: input, shape index: {}]   ;;  %s453_s7 = inlined_call_operand.vmem [shape: f32[8,128], index: 7, kind: output, shape index: {}]  }
   0x1   :  { %v344_v0 = vld [vmem:[%s446_s0] sm:$0x1f]   ;;  %v81_v2 = vsel %vm79_vm0, 4294967295, %v349_v1  ;;  %v35_v7 = vld [vmem:[%s448_s2 + $0x10] sm:$0xff]  ;;  %v350_v8 = vmov 0   ;;  %v346_v9 = vld [vmem:[%s447_s1 + $0x8] sm:$0xff]  }
   0x2   :  { %v345_v3 = vld [vmem:[%s447_s1] sm:$0xff]   ;;  %v82_v4 = vsel %vm80_vm1, %v81_v2, 0  ;;  %342 = vset.pattern.permute.xlu0 %v350_v8  ;;  %343 = vset.pattern.permute.xlu1 %v350_v8  ;;  %v34_v10 = vld [vmem:[%s448_s2 + $0x8] sm:$0xff]  ;;  %v36_v11 = vld [vmem:[%s448_s2 + $0x18] sm:$0xff]  ;;  %vm179_vm3 = vcmask 261120   ;;  %v351_v37 = vmov 0.0  }
   0x3   :  { %v84_v5 = vand.u32 %v344_v0, %v82_v4  ;;  %318 = vmatprep.mubr.msk.bf16.mxu0 %vm72_vm2, %v345_v3  ;;  %v33_v6 = vld [vmem:[%s448_s2] sm:$0xff]  ;;  %49 = vperm.xlu1 %343, %v35_v7   ;;  %v146_v13 = vld [vmem:[%s449_s4 + $0x8] sm:$0xff]  ;;  %v147_v14 = vld [vmem:[%s449_s4 + $0x10] sm:$0xff]  ;;  %vm352_vm4 = vmmov 0  }
   0x4   :  { %39 = vperm.xlu0 %342, %v33_v6   ;;  %v145_v12 = vld [vmem:[%s449_s4] sm:$0xff]  ;;  %v148_v15 = vld [vmem:[%s449_s4 + $0x18] sm:$0xff]  ;;  %v348_v36 = vld [vmem:[%s451_s3 + $0x8] sm:$0xff]  }
   0x5   :  { %316 = vmatprep.subr.bf16.mxu0 %v84_v5  ;;  %v242_v16 = vld [vmem:[%s450_s6] sm:$0xff] }
   0x6   :  { %317 = vmatpush3.bf16.msra.mxu0 %v84_v5  ;;  %v347_v17 = vld [vmem:[%s451_s3] sm:$0xff]  }
   0x7   :  { %54 = vperm.xlu1 %343, %v36_v11   ;;  %326 = vmatprep.mubr.msk.bf16.mxu1 %vm179_vm3, %v347_v17  ;;  %v241_v56 = vld [vmem:[%s452_s5] sm:$0xf] }
   0x8   :  { %44 = vperm.xlu0 %342, %v34_v10   ;;  %330 = vmatprep.subr.bf16.mxu0 %v351_v37 }
   0x9   :  { %319 = vmatmul.mubr.msk.bf16.vlgmr.msra.gmra.mrb[0].mxu0 %vm72_vm2, %v346_v9 }
   0xa   :  { %334 = vmatprep.mubr.msk.bf16.mxu0 %vm352_vm4, %v351_v37 }
   0xb   :  { %156 = vperm.xlu1 %343, %v146_v13  }
   0xc   :  { %151 = vperm.xlu0 %342, %v145_v12  }
   0xf   :  { %166 = vperm.xlu1 %343, %v148_v15  }
  0x10   :  { %161 = vperm.xlu0 %342, %v147_v14  }
  0x14   :  { %245 = vperm.xlu0 %342, %v242_v16  }
  0x82   :  { %v50_v18 = vpop.permute.xlu1 %49 }
  0x83   :  { %v40_v19 = vpop.permute.xlu0 %39 }
  0x86   :  { %v55_v23 = vpop.permute.xlu1 %54 }
  0x87   :  { %v45_v26 = vpop.permute.xlu0 %44 }
  0x8a   :  { %v157_v39 = vpop.permute.xlu1 %156 }
  0x8b   :  { %v152_v38 = vpop.permute.xlu0 %151 }
  0x8e   :  { %v167_v44 = vpop.permute.xlu1 %166 }
  0x8f   :  { %v162_v40 = vpop.permute.xlu0 %161 }
  0x93   :  { %v246_v57 = vpop.permute.xlu0 %245 }
  0xdc   :  { %v320_v20 = vpop.f32.mrb[0].mxu0 }
  0xdd   :  { %v129_v21 = vadd.f32 %v320_v20, %v50_v18  ;;  %v120_v22 = vpop.f32.mrb[1].mxu0 }
  0xde   :  { %v121_v24 = vadd.f32 %v120_v22, %v40_v19  ;;  %v321_v25 = vpop.f32.mrb[2].mxu0 }
  0xdf   :  { %v132_v27 = vadd.f32 %v321_v25, %v55_v23  ;;  %v123_v28 = vpop.f32.mrb[3].mxu0  ;;  %v137_v30 = vmax.f32 %v129_v21, 0.0 }
  0xe0   :  { %v124_v29 = vadd.f32 %v123_v28, %v45_v26  ;;  %v135_v32 = vmax.f32 %v121_v24, 0.0 }
  0xe1   :  { %v138_v31 = vmax.f32 %v132_v27, 0.0 }
  0xe2   :  { %v136_v33 = vmax.f32 %v124_v29, 0.0 }
  0xe3   :  { %v140_v34 = vpack.c.bf16 %v138_v31, %v137_v30 }
  0xe4   :  { %v139_v35 = vpack.c.bf16 %v136_v33, %v135_v32 }
  0xe6   :  { %322 = vmatprep.subr.bf16.mxu1 %v139_v35 }
  0xe7   :  { %323 = vmatpush3.bf16.msra.mxu1 %v139_v35 }
  0xe8   :  { %324 = vmatprep.subr.bf16.mxu1 %v140_v34 }
  0xeb   :  { %325 = vmatpush3.bf16.msra.mxu1 %v140_v34 }
  0xee   :  { %327 = vmatmul.mubr.msk.bf16.vlgmr.msra.gmra.mrb[0].mxu1 %vm179_vm3, %v348_v36 }
 0x1c1   :  { %v328_v41 = vpop.f32.mrb[0].mxu1 }
 0x1c2   :  { %v229_v42 = vadd.f32 %v328_v41, %v162_v40  ;;  %v220_v43 = vpop.f32.mrb[1].mxu1 }
 0x1c3   :  { %v221_v45 = vadd.f32 %v220_v43, %v152_v38  ;;  %v329_v46 = vpop.f32.mrb[2].mxu1 }
 0x1c4   :  { %v232_v47 = vadd.f32 %v329_v46, %v167_v44  ;;  %v223_v48 = vpop.f32.mrb[3].mxu1  ;;  %v237_v50 = vmax.f32 %v229_v42, 0.0 }
 0x1c5   :  { %v224_v49 = vadd.f32 %v223_v48, %v157_v39  ;;  %v235_v52 = vmax.f32 %v221_v45, 0.0 }
 0x1c6   :  { %v238_v51 = vmax.f32 %v232_v47, 0.0 }
 0x1c7   :  { %v236_v53 = vmax.f32 %v224_v49, 0.0 }
 0x1c8   :  { %v240_v54 = vpack.c.bf16 %v238_v51, %v237_v50 }
 0x1c9   :  { %v239_v55 = vpack.c.bf16 %v236_v53, %v235_v52 }
 0x1cb   :  { %331 = vmatpush3.bf16.msra.mxu0 %v239_v55 }
 0x1cc   :  { %332 = vmatprep.subr.bf16.mxu0 %v351_v37 }
 0x1cf   :  { %333 = vmatpush3.bf16.msra.mxu0 %v240_v54 }
 0x1d2   :  { %335 = vmatmul.mubr.msk.bf16.vlgmr.msra.gmra.mrb[4].mxu0 %vm179_vm3, %v241_v56 }
 0x2a5   :  { %v285_v58 = vpop.f32.mrb[4].mxu0 }
 0x2a6   :  { %v286_v59 = vadd.f32 %v285_v58, %v246_v57  ;;  %v336_v60 = vpop.f32.mrb[5].mxu0 }
 0x2a7   :  { %v288_v61 = vpop.f32.mrb[6].mxu0 }
 0x2a8   :  { %291 = vst [vmem:[%s453_s7] sm:$0xff] %v286_v59  ;;  %v337_v62 = vpop.f32.mrb[7].mxu0 }

</bundles_post_ra>
